<compile_context>
chip_gen: v7x
topology: tpu7x:2x2x1
jax: 0.10.0
libtpu: 0.0.40
codegen_flags: <defaults>
</compile_context>

<pallas_src>
import functools

import jax
import jax.numpy as jnp
from jax import lax
from jax.experimental import pallas as pl
from jax.experimental.pallas import tpu as pltpu

_LANES = 128
_SUBLANES = 8


def _make_bce_kernel(pw_smoke, total_elems, tile_rows, tiles_per_chunk,
                     has_padding):
    """Builds the kernel with compile-time constants baked in."""
    pw_smoke = float(pw_smoke)
    total_elems = int(total_elems)      # NOTE: assumes total_elems < 2**31
    tile_elems = tile_rows * _LANES

    def kernel(pred_ref, gt_ref, out_ref, acc_ref):
        c = pl.program_id(0)            # parallel chunk axis (megacore on v7x)
        t = pl.program_id(1)            # arbitrary reduction axis

        @pl.when(t == 0)
        def _init():
            acc_ref[...] = jnp.zeros_like(acc_ref)

        # Upcast inside the kernel: f32 math / accumulation everywhere.
        x = pred_ref[...].astype(jnp.float32)   # logits            (TR, 128)
        y = gt_ref[...].astype(jnp.float32)     # targets in [0, 1] (TR, 128)

        # (pos_weight - 1) per lane: even lane -> smoke channel, odd -> fire.
        lane1 = lax.broadcasted_iota(jnp.int32, (1, _LANES), 1)
        pwm1 = jnp.where((lane1 % 2) == 0,
                         jnp.float32(pw_smoke - 1.0), jnp.float32(0.0))

        # PyTorch-stable BCEWithLogitsLoss with pos_weight:
        #   l = (1-y)*x + (1 + (pw-1)*y) * (log1p(exp(-|x|)) + max(-x, 0))
        log_weight = 1.0 + pwm1 * y
        stable = jnp.log1p(jnp.exp(-jnp.abs(x))) + jnp.maximum(-x, 0.0)
        per_elem = (1.0 - y) * x + log_weight * stable

        if has_padding:
            tile_idx = c * tiles_per_chunk + t
            tile_start = tile_idx * tile_elems
            needs_mask = (tile_start + tile_elems) > total_elems

            @pl.when(needs_mask)
            def _masked_accum():
                # Only tiles containing zero-padded tail pay for the mask.
                row = lax.broadcasted_iota(jnp.int32, (tile_rows, _LANES), 0)
                lane = lax.broadcasted_iota(jnp.int32, (tile_rows, _LANES), 1)
                flat_idx = tile_start + row * _LANES + lane
                acc_ref[...] += jnp.where(flat_idx < total_elems, per_elem, 0.0)

            @pl.when(jnp.logical_not(needs_mask))
            def _plain_accum():
                acc_ref[...] += per_elem
        else:
            # No padding at all: pure VPU accumulate on every iteration.
            acc_ref[...] += per_elem

        # One cross-sublane reduce + one lane-dense (1,128) store per chunk.
        @pl.when(t == tiles_per_chunk - 1)
        def _fini():
            out_ref[...] = jnp.sum(acc_ref[...], axis=0, keepdims=True)

    return kernel


@functools.partial(jax.jit, static_argnames=("smoke_precision_weight",
                                              "max_tile_rows", "num_chunks"))
def bce_loss_forward(predictions, ground_truth, smoke_precision_weight=2.0,
                     max_tile_rows=1024, num_chunks=2):
    """Equivalent of BCE_LOSS.forward: returns (total, smoke_loss, fire_loss)."""
    assert predictions.shape == ground_truth.shape
    assert predictions.shape[-1] == 2

    # Layout-preserving flatten (no transpose, no extra HBM traffic).
    pred_flat = predictions.reshape(-1)
    gt_flat = ground_truth.reshape(-1)
    total = pred_flat.shape[0]

    max_tile_rows = max(_SUBLANES, (int(max_tile_rows) // _SUBLANES) * _SUBLANES)

    rows = pl.cdiv(total, _LANES)
    rows8 = pl.cdiv(rows, _SUBLANES) * _SUBLANES

    # Use both TensorCores (v7x) only when there is enough work per chunk.
    nc = num_chunks if rows8 >= num_chunks * _SUBLANES else 1

    # Tight tiling: pick tiles_per_chunk first (caps tile at max_tile_rows),
    # then the smallest 8-row-aligned tile that still covers rows8.  Keeps the
    # padded remainder below 8 * n_tiles rows instead of up to a whole tile.
    tiles_per_chunk = pl.cdiv(rows8, nc * max_tile_rows)
    n_tiles = nc * tiles_per_chunk
    tr = _SUBLANES * pl.cdiv(rows8, _SUBLANES * n_tiles)
    rows_padded = n_tiles * tr
    padded_total = rows_padded * _LANES
    has_padding = padded_total != total

    if has_padding:
        # Zero-padded tail; masked to exactly zero loss inside the kernel.
        pred_flat = jnp.pad(pred_flat, (0, padded_total - total))
        gt_flat = jnp.pad(gt_flat, (0, padded_total - total))

    pred2 = pred_flat.reshape(rows_padded, _LANES)
    gt2 = gt_flat.reshape(rows_padded, _LANES)

    kernel = _make_bce_kernel(smoke_precision_weight, total, tr,
                              tiles_per_chunk, has_padding)

    lane_sums = pl.pallas_call(
        kernel,
        out_shape=jax.ShapeDtypeStruct((nc, 1, _LANES), jnp.float32),
        grid_spec=pltpu.PrefetchScalarGridSpec(
            num_scalar_prefetch=0,
            grid=(nc, tiles_per_chunk),
            in_specs=[
                pl.BlockSpec((tr, _LANES),
                             lambda c, t: (c * tiles_per_chunk + t, 0)),
                pl.BlockSpec((tr, _LANES),
                             lambda c, t: (c * tiles_per_chunk + t, 0)),
            ],
            # Leading dim squeezed: kernel sees a lane-dense (1,128) output tile,
            # written once per chunk in the epilogue.
            out_specs=pl.BlockSpec((None, 1, _LANES), lambda c, t: (c, 0, 0)),
            scratch_shapes=[pltpu.VMEM((tr, _LANES), jnp.float32)],
        ),
        compiler_params=pltpu.CompilerParams(
            dimension_semantics=("parallel", "arbitrary"),
        ),
    )(pred2, gt2)

    # Tiny finalize in the wrapper: combine chunks, split lanes by parity
    # (even lane -> channel 0 = smoke, odd lane -> channel 1 = fire).
    lane_total = jnp.sum(lane_sums, axis=(0, 1))                       # (128,)
    per_channel = jnp.sum(lane_total.reshape(_LANES // 2, 2), axis=0)  # (2,)
    smoke_loss = per_channel[0]
    fire_loss = per_channel[1]
    total_loss = smoke_loss + fire_loss
    # TODO(synk): PyTorch module also caches .item() scalars for
    # get_last_losses(); here they are simply returned as JAX scalars.
    return total_loss, smoke_loss, fire_loss


def _reference(predictions, ground_truth, smoke_precision_weight):
    """Pure-JAX reference for verification."""
    def bce_sum(x, y, pw):
        x = x.astype(jnp.float32)
        y = y.astype(jnp.float32)
        lw = 1.0 + (pw - 1.0) * y
        stable = jnp.log1p(jnp.exp(-jnp.abs(x))) + jnp.maximum(-x, 0.0)
        return jnp.sum((1.0 - y) * x + lw * stable)

    s = bce_sum(predictions[..., 0], ground_truth[..., 0], smoke_precision_weight)
    f = bce_sum(predictions[..., 1], ground_truth[..., 1], 1.0)
    return s + f, s, f


if __name__ == "__main__":
    smoke_precision_weight = 2.0  # deterministic init of the module's pos_weight
    key = jax.random.PRNGKey(0)
    k1, k2, k3, k4 = jax.random.split(key, 4)

    # Case 1: image-like batch, exactly divisible flat size (zero-copy path).
    #   predictions: raw logits, channels-last (..., 2); ground_truth: {0,1}.
    shape1 = (2, 16, 16, 2)
    pred1 = jax.random.normal(k1, shape1, dtype=jnp.float32) * 2.0
    gt1 = jax.random.bernoulli(k2, 0.5, shape1).astype(jnp.float32)

    total1, smoke1, fire1 = bce_loss_forward(
        pred1, gt1, smoke_precision_weight=smoke_precision_weight)
    total1 = jax.block_until_ready(total1)
    r_total1, r_smoke1, r_fire1 = _reference(pred1, gt1, smoke_precision_weight)
    assert jnp.allclose(total1, r_total1, rtol=1e-5, atol=1e-4), (total1, r_total1)
    assert jnp.allclose(smoke1, r_smoke1, rtol=1e-5, atol=1e-4)
    assert jnp.allclose(fire1, r_fire1, rtol=1e-5, atol=1e-4)

    # Case 2: ragged size (exercises the padded-tail mask path).
    shape2 = (3, 7, 5, 2)
    pred2 = jax.random.normal(k3, shape2, dtype=jnp.float32) * 2.0
    gt2 = jax.random.bernoulli(k4, 0.5, shape2).astype(jnp.float32)

    total2, smoke2, fire2 = bce_loss_forward(
        pred2, gt2, smoke_precision_weight=smoke_precision_weight)
    total2 = jax.block_until_ready(total2)
    r_total2, r_smoke2, r_fire2 = _reference(pred2, gt2, smoke_precision_weight)
    assert jnp.allclose(total2, r_total2, rtol=1e-5, atol=1e-4), (total2, r_total2)
    assert jnp.allclose(smoke2, r_smoke2, rtol=1e-5, atol=1e-4)
    assert jnp.allclose(fire2, r_fire2, rtol=1e-5, atol=1e-4)

    print("KERNEL_OK")
</pallas_src>

<mosaic_0001>
module attributes {stable_mosaic.version = 11 : i64} {
  func.func @kernel(%arg0: i32, %arg1: i32, %arg2: memref<8x128xf32, #tpu.memory_space<vmem>>, %arg3: memref<8x128xf32, #tpu.memory_space<vmem>>, %arg4: memref<1x1x128xf32, #tpu.memory_space<vmem>>, %arg5: memref<8x128xf32, #tpu.memory_space<vmem>>) attributes {dimension_semantics = [#tpu.dimension_semantics<parallel>, #tpu.dimension_semantics<arbitrary>], iteration_bounds = array<i64: 1, 1>, scalar_prefetch = 0 : i64, scratch_operands = 1 : i64, tpu.core_type = #tpu.core_type<tc>, window_params = [{transform_indices = @transform_0, window_bounds = array<i64: 8, 128>}, {transform_indices = @transform_1, window_bounds = array<i64: 8, 128>}, {transform_indices = @transform_2, window_bounds = array<i64: 1, 1, 128>}]} {
    %c0_i32 = arith.constant 0 : i32
    %0 = arith.cmpi eq, %arg1, %c0_i32 : i32
    %1 = arith.extui %0 : i1 to i32
    %c0_i32_0 = arith.constant 0 : i32
    %2 = arith.cmpi ne, %1, %c0_i32_0 : i32
    scf.if %2 {
      %cst_21 = arith.constant 0.000000e+00 : f32
      %52 = vector.broadcast %cst_21 : f32 to vector<8x128xf32>
      %c0_22 = arith.constant 0 : index
      %c0_23 = arith.constant 0 : index
      %53 = vector.load %arg5[%c0_22, %c0_23] : memref<8x128xf32, #tpu.memory_space<vmem>>, vector<8x128xf32>
      tpu.vector_store %arg5[%c0_22, %c0_23], %52 {strides = array<i32>} : memref<8x128xf32, #tpu.memory_space<vmem>>, vector<8x128xf32>,
    } else {
    }
    %c0 = arith.constant 0 : index
    %c0_1 = arith.constant 0 : index
    %3 = vector.load %arg2[%c0, %c0_1] : memref<8x128xf32, #tpu.memory_space<vmem>>, vector<8x128xf32>
    %c0_2 = arith.constant 0 : index
    %c0_3 = arith.constant 0 : index
    %4 = vector.load %arg3[%c0_2, %c0_3] : memref<8x128xf32, #tpu.memory_space<vmem>>, vector<8x128xf32>
    %5 = tpu.iota {dimensions = array<i32: 1>} : vector<1x128xi32>
    %c2_i32 = arith.constant 2 : i32
    %c0_i32_4 = arith.constant 0 : i32
    %6 = arith.cmpi eq, %c2_i32, %c0_i32_4 : i32
    %c1_i32 = arith.constant 1 : i32
    %7 = arith.select %6, %c1_i32, %c2_i32 : i32
    %8 = vector.broadcast %7 : i32 to vector<1x128xi32>
    %9 = arith.remsi %5, %8 : vector<1x128xi32>
    %c0_i32_5 = arith.constant 0 : i32
    %10 = vector.broadcast %c0_i32_5 : i32 to vector<1x128xi32>
    %11 = arith.cmpi ne, %9, %10 : vector<1x128xi32>
    %c0_i32_6 = arith.constant 0 : i32
    %12 = vector.broadcast %c0_i32_6 : i32 to vector<1x128xi32>
    %13 = arith.cmpi slt, %9, %12 : vector<1x128xi32>
    %c0_i32_7 = arith.constant 0 : i32
    %14 = arith.cmpi slt, %7, %c0_i32_7 : i32
    %15 = vector.broadcast %14 : i1 to vector<1x128xi1>
    %16 = vector.broadcast %15 : vector<1x128xi1> to vector<1x128xi1>
    %17 = arith.xori %13, %16 : vector<1x128xi1>
    %18 = arith.andi %17, %11 : vector<1x128xi1>
    %19 = vector.broadcast %7 : i32 to vector<1x128xi32>
    %20 = arith.addi %9, %19 : vector<1x128xi32>
    %21 = arith.select %18, %20, %9 : vector<1x128xi1>, vector<1x128xi32>
    %c0_i32_8 = arith.constant 0 : i32
    %22 = vector.broadcast %c0_i32_8 : i32 to vector<1x128xi32>
    %23 = arith.cmpi eq, %21, %22 : vector<1x128xi32>
    %cst = arith.constant 1.000000e+00 : f32
    %cst_9 = arith.constant 0.000000e+00 : f32
    %24 = vector.broadcast %cst : f32 to vector<1x128xf32>
    %25 = vector.broadcast %cst_9 : f32 to vector<1x128xf32>
    %26 = arith.select %23, %24, %25 : vector<1x128xi1>, vector<1x128xf32>
    %27 = vector.broadcast %26 : vector<1x128xf32> to vector<8x128xf32>
    %28 = arith.mulf %27, %4 : vector<8x128xf32>
    %cst_10 = arith.constant 1.000000e+00 : f32
    %29 = vector.broadcast %cst_10 : f32 to vector<8x128xf32>
    %30 = arith.addf %29, %28 : vector<8x128xf32>
    %31 = math.absf %3 : vector<8x128xf32>
    %cst_11 = arith.constant 0.000000e+00 : f32
    %32 = vector.broadcast %cst_11 : f32 to vector<8x128xf32>
    %33 = arith.subf %32, %31 : vector<8x128xf32>
    %34 = math.exp %33 : vector<8x128xf32>
    %35 = math.log1p %34 : vector<8x128xf32>
    %cst_12 = arith.constant 0.000000e+00 : f32
    %36 = vector.broadcast %cst_12 : f32 to vector<8x128xf32>
    %37 = arith.subf %36, %3 : vector<8x128xf32>
    %cst_13 = arith.constant 0.000000e+00 : f32
    %38 = vector.broadcast %cst_13 : f32 to vector<8x128xf32>
    %39 = arith.maximumf %37, %38 : vector<8x128xf32>
    %40 = arith.addf %35, %39 : vector<8x128xf32>
    %cst_14 = arith.constant 1.000000e+00 : f32
    %41 = vector.broadcast %cst_14 : f32 to vector<8x128xf32>
    %42 = arith.subf %41, %4 : vector<8x128xf32>
    %43 = arith.mulf %42, %3 : vector<8x128xf32>
    %44 = arith.mulf %30, %40 : vector<8x128xf32>
    %45 = arith.addf %43, %44 : vector<8x128xf32>
    %c0_15 = arith.constant 0 : index
    %c0_16 = arith.constant 0 : index
    %46 = vector.load %arg5[%c0_15, %c0_16] : memref<8x128xf32, #tpu.memory_space<vmem>>, vector<8x128xf32>
    %47 = arith.addf %46, %45 : vector<8x128xf32>
    %c0_17 = arith.constant 0 : index
    %c0_18 = arith.constant 0 : index
    %48 = vector.load %arg5[%c0_17, %c0_18] : memref<8x128xf32, #tpu.memory_space<vmem>>, vector<8x128xf32>
    tpu.vector_store %arg5[%c0_17, %c0_18], %47 {strides = array<i32>} : memref<8x128xf32, #tpu.memory_space<vmem>>, vector<8x128xf32>,
    %c0_i32_19 = arith.constant 0 : i32
    %49 = arith.cmpi eq, %arg1, %c0_i32_19 : i32
    %50 = arith.extui %49 : i1 to i32
    %c0_i32_20 = arith.constant 0 : i32
    %51 = arith.cmpi ne, %50, %c0_i32_20 : i32
    scf.if %51 {
      %c0_21 = arith.constant 0 : index
      %c0_22 = arith.constant 0 : index
      %52 = vector.load %arg5[%c0_21, %c0_22] : memref<8x128xf32, #tpu.memory_space<vmem>>, vector<8x128xf32>
      %cst_23 = arith.constant dense<0.000000e+00> : vector<128xf32>
      %53 = vector.multi_reduction <add>, %52, %cst_23 [0] : vector<8x128xf32> to vector<128xf32>
      %54 = vector.shape_cast %53 : vector<128xf32> to vector<1x128xf32>
      %c0_24 = arith.constant 0 : index
      %c0_25 = arith.constant 0 : index
      %c0_26 = arith.constant 0 : index
      %55 = vector.load %arg4[%c0_24, %c0_25, %c0_26] : memref<1x1x128xf32, #tpu.memory_space<vmem>>, vector<1x1x128xf32>
      %56 = vector.shape_cast %55 : vector<1x1x128xf32> to vector<1x128xf32>
      %57 = vector.shape_cast %54 : vector<1x128xf32> to vector<1x1x128xf32>
      tpu.vector_store %arg4[%c0_24, %c0_25, %c0_26], %57 {strides = array<i32>} : memref<1x1x128xf32, #tpu.memory_space<vmem>>, vector<1x1x128xf32>,
    } else {
    }
    return
  }
  func.func @transform_0(%arg0: i32, %arg1: i32) -> (i32, i32) {
    %c1_i32 = arith.constant 1 : i32
    %0 = arith.muli %arg0, %c1_i32 : i32
    %1 = arith.addi %0, %arg1 : i32
    %c0_i32 = arith.constant 0 : i32
    %c0_i32_0 = arith.constant 0 : i32
    return %1, %c0_i32 : i32, i32
  }
  func.func @transform_1(%arg0: i32, %arg1: i32) -> (i32, i32) {
    %c1_i32 = arith.constant 1 : i32
    %0 = arith.muli %arg0, %c1_i32 : i32
    %1 = arith.addi %0, %arg1 : i32
    %c0_i32 = arith.constant 0 : i32
    %c0_i32_0 = arith.constant 0 : i32
    return %1, %c0_i32 : i32, i32
  }
  func.func @transform_2(%arg0: i32, %arg1: i32) -> (i32, i32, i32) {
    %c0_i32 = arith.constant 0 : i32
    %c0_i32_0 = arith.constant 0 : i32
    %c0_i32_1 = arith.constant 0 : i32
    return %arg0, %c0_i32, %c0_i32_0 : i32, i32, i32
  }
}

</mosaic_0001>

<bundles_post_ra>
// kernel: bce_loss_forward.1
= control target key start
LH: loop header
LB: loop body
LE: loop exit
PB: predicated region body
PF: predicated region fallthrough
CT: control target
= control target key end

     0   :  { %v52_v4 = vlaneseq  ;;  %v125_v11 = vmov 0.0   ;;  %s150_s0 = inlined_call_operand.vmem [shape: f32[8,128], index: 0, kind: input, shape index: {}]   ;;  %s151_s1 = inlined_call_operand.vmem [shape: f32[8,128], index: 1, kind: input, shape index: {}]   ;;  %s152_s2 = inlined_call_operand.vmem [shape: f32[1,1,128], index: 2, kind: output, shape index: {}]  }
   0x1   :  { %v50_v0 = vld [vmem:[%s150_s0] sm:$0xff] }
   0x2   :  { %v70_v1 = vand.u32 2147483647, %v50_v0  ;;  %v53_v5 = vand.u32 127, %v52_v4  ;;  %v51_v10 = vld [vmem:[%s151_s1] sm:$0xff]  ;;  %v83_v15 = vsub.f32 0.0, %v50_v0 }
   0x3   :  { %v86_v20 = vsub.f32 1.0, %v51_v10 }
   0x4   :  { %v71_v2 = vsub.f32 0.0, %v70_v1  ;;  %v58_v7 = vand.u32 1, %v53_v5  ;;  %v84_v19 = vmax.f32 %v83_v15, 0.0 }
   0x5   :  { %v87_v25 = vmul.f32 %v86_v20, %v50_v0 }
   0x6   :  { %v72_v3 = vmul.f32 1.442695, %v71_v2  ;;  %vm66_vm0 = vcmp.eq.s32.totalorder %v58_v7, 0 }
   0x7   :  { %v67_v12 = vsel %vm66_vm0, 1.0, %v125_v11 }
   0x8   :  { %121 = vpow2.f32 %v72_v3  ;;  %v68_v16 = vmul.f32 %v67_v12, %v51_v10 }
   0xa   :  { %v69_v22 = vadd.f32 1.0, %v68_v16 }
  0x12   :  { %v122_v6 = vpop.eup %121 }
  0x13   :  { %v74_v8 = vadd.f32 1.0, %v122_v6  ;;  %v77_v9 = vmul.f32 -0.5, %v122_v6  ;;  %v80_v14 = vand.u32 2147483647, %v122_v6 }
  0x15   :  { %123 = vlog2.f32 %v74_v8  ;;  %v78_v13 = vadd.f32 1.0, %v77_v9  ;;  %vm81_vm1 = vcmp.lt.f32.partialorder %v80_v14, 0.0004427343 }
  0x17   :  { %v79_v17 = vmul.f32 %v122_v6, %v78_v13 }
  0x1f   :  { %v124_v18 = vpop.eup %123 }
  0x20   :  { %v76_v21 = vmul.f32 0.6931472, %v124_v18 }
  0x22   :  { %v82_v23 = vsel %vm81_vm1, %v79_v17, %v76_v21 }
  0x23   :  { %v85_v24 = vadd.f32 %v84_v19, %v82_v23 }
  0x25   :  { %v88_v26 = vmul.f32 %v85_v24, %v69_v22 }
  0x27   :  { %v89_v27 = vadd.f32 %v88_v26, %v87_v25 }
  0x29   :  { %v97_v28 = vrot.slane %v89_v27, 4 }
  0x2b   :  { %v98_v29 = vadd.f32 %v97_v28, %v89_v27 }
  0x2d   :  { %v99_v30 = vrot.slane %v98_v29, 2 }
  0x2f   :  { %v100_v31 = vadd.f32 %v99_v30, %v98_v29 }
  0x31   :  { %v101_v32 = vrot.slane %v100_v31, 1 }
  0x33   :  { %v102_v33 = vadd.f32 %v101_v32, %v100_v31 }
  0x35   :  { %103 = vst [vmem:[%s152_s2] sm:$0x1] %v102_v33 }

</bundles_post_ra>
